<compile_context>
chip_gen: v6e
topology: v6e:2x2x1
jax: 0.10.0
libtpu: 0.0.40
codegen_flags: <defaults>
</compile_context>

<pallas_src>
import jax
import jax.numpy as jnp
from jax import lax
from jax.experimental import pallas as pl
from jax.experimental.pallas import tpu as pltpu

_LANE = 128
_SUBLANE = 8
_MAX_TILE_ROWS = 8192      # 4 MiB per f32 input tile
_TARGET_BLOCKS = 8         # aim for >= 8 grid steps (v7x dual-TC + pipelining)


def _round_up(x, m):
    return ((x + m - 1) // m) * m


def _rmse_partial_kernel(valid_rows_ref, p_ref, t_ref, o_ref):
    """One (tile_rows, 128) input block -> one (1, 8, 128) partial sum of squares."""
    i = pl.program_id(0)
    tile_rows = p_ref.shape[0]
    n_chunks = tile_rows // _SUBLANE
    # Rows of this block that hold real data (the last block may run past the
    # end of the array; those rows contain unspecified values).
    rows_left = valid_rows_ref[0] - i * tile_rows
    # Hoisted constant: sublane index of every element of an (8, 128) vreg.
    row_iota = lax.broadcasted_iota(jnp.int32, (_SUBLANE, _LANE), 0)

    def body(c, acc):
        r0 = pl.multiple_of(c * _SUBLANE, _SUBLANE)
        p = p_ref[pl.ds(r0, _SUBLANE), :].astype(jnp.float32)
        t = t_ref[pl.ds(r0, _SUBLANE), :].astype(jnp.float32)
        d = p - t
        # Mask BEFORE squaring so garbage rows (possibly Inf/NaN) contribute 0.
        d = jnp.where((row_iota + c * _SUBLANE) < rows_left, d, 0.0)
        return acc + d * d

    acc = lax.fori_loop(
        0, n_chunks, body,
        jnp.zeros((_SUBLANE, _LANE), jnp.float32),
        unroll=min(8, n_chunks),
    )
    o_ref[...] = acc[None, :, :]


def rmse_loss(pred, target):
    """sqrt(mean((pred - target)^2)) via a parallel partial-sum Pallas kernel."""
    assert pred.shape == target.shape, "pred/target must have identical shapes"
    total_n = pred.size
    assert total_n > 0

    flat_p = pred.reshape(-1)
    flat_t = target.reshape(-1)

    rows = total_n // _LANE          # full 128-element rows handled by the kernel
    main_n = rows * _LANE
    tail_n = total_n - main_n        # < 128 leftover elements -> tiny JAX epilogue

    # Sub-128 tail: sum its squared diffs in plain JAX instead of padding
    # (and thus copying) both full inputs through HBM.
    if tail_n:
        dt = flat_p[main_n:].astype(jnp.float32) - flat_t[main_n:].astype(jnp.float32)
        tail_sq = jnp.sum(dt * dt)
    else:
        tail_sq = jnp.float32(0.0)

    if rows == 0:
        # Everything fit in the tail; no kernel launch needed.
        return jnp.sqrt(tail_sq * (1.0 / float(total_n)))

    # Lane-dense (rows, 128) view.  Zero-copy bitcast when total_n % 128 == 0;
    # otherwise one static prefix slice (still far cheaper than padding both).
    if tail_n:
        p2 = flat_p[:main_n].reshape(rows, _LANE)
        t2 = flat_t[:main_n].reshape(rows, _LANE)
    else:
        p2 = flat_p.reshape(rows, _LANE)
        t2 = flat_t.reshape(rows, _LANE)

    # ---- generation-aware tile / VMEM budgeting ---------------------------
    try:
        vmem_cap = pltpu.get_tpu_info().vmem_capacity_bytes
    except Exception:
        vmem_cap = 64 * 1024 * 1024          # v7x-safe lower bound (per TC)
    vmem_limit = min(28 * 1024 * 1024, vmem_cap // 2)

    # Aim for >= _TARGET_BLOCKS grid steps so the "parallel" axis can shard
    # across both TensorCores on v7x, but never below one vreg row group.
    tile_rows = max(_SUBLANE, _round_up(pl.cdiv(rows, _TARGET_BLOCKS), _SUBLANE))
    tile_rows = min(tile_rows, _MAX_TILE_ROWS)
    # Keep 2 inputs x 2 pipeline buffers within ~3/4 of the scoped-VMEM limit.
    bytes_per_row = _LANE * (p2.dtype.itemsize + t2.dtype.itemsize)
    vmem_tile_cap = max(
        _SUBLANE,
        ((vmem_limit * 3 // 4) // (2 * bytes_per_row)) // _SUBLANE * _SUBLANE,
    )
    tile_rows = min(tile_rows, vmem_tile_cap)

    num_blocks = pl.cdiv(rows, tile_rows)
    valid_rows = jnp.array([rows], dtype=jnp.int32)

    partials = pl.pallas_call(
        _rmse_partial_kernel,
        out_shape=jax.ShapeDtypeStruct((num_blocks, _SUBLANE, _LANE), jnp.float32),
        grid_spec=pltpu.PrefetchScalarGridSpec(
            num_scalar_prefetch=1,
            grid=(num_blocks,),
            in_specs=[
                pl.BlockSpec((tile_rows, _LANE), lambda i, vr: (i, 0)),
                pl.BlockSpec((tile_rows, _LANE), lambda i, vr: (i, 0)),
            ],
            out_specs=pl.BlockSpec((1, _SUBLANE, _LANE), lambda i, vr: (i, 0, 0)),
        ),
        compiler_params=pltpu.CompilerParams(
            # Independent partials per block -> grid can shard across TCs (v7x).
            dimension_semantics=("parallel",),
            vmem_limit_bytes=vmem_limit,
        ),
    )(valid_rows, p2, t2)

    total_sq = jnp.sum(partials) + tail_sq
    # Divide by the TRUE element count (Python-float reciprocal: exact divisor
    # handling even beyond 2^24 elements).  Accumulation is f32 throughout;
    # expect a few-ulp drift vs an f64 reference for very large N.
    return jnp.sqrt(total_sq * (1.0 / float(total_n)))


if __name__ == "__main__":
    key = jax.random.PRNGKey(0)
    k1, k2 = jax.random.split(key)
    # NCHW like PyTorch: batch=2, channels=4, spatial=16x16
    pred = jax.random.normal(k1, (2, 4, 16, 16), dtype=jnp.float32)
    target = jax.random.normal(k2, (2, 4, 16, 16), dtype=jnp.float32)

    loss = rmse_loss(pred, target)
    jax.block_until_ready(loss)

    # sanity check against plain-JAX reference
    ref = jnp.sqrt(jnp.mean((pred - target) ** 2))
    assert jnp.allclose(loss, ref, rtol=1e-5, atol=1e-5), (loss, ref)

    print("KERNEL_OK")
</pallas_src>

<mosaic_0001>
module attributes {stable_mosaic.version = 11 : i64} {
  func.func @_rmse_partial_kernel(%arg0: i32, %arg1: memref<1xi32, #tpu.memory_space<smem>>, %arg2: memref<8x128xf32, #tpu.memory_space<vmem>>, %arg3: memref<8x128xf32, #tpu.memory_space<vmem>>, %arg4: memref<1x8x128xf32, #tpu.memory_space<vmem>>) attributes {dimension_semantics = [#tpu.dimension_semantics<parallel>], iteration_bounds = array<i64: 2>, scalar_prefetch = 1 : i64, scratch_operands = 0 : i64, tpu.core_type = #tpu.core_type<tc>, window_params = [{transform_indices = @transform_0, window_bounds = array<i64: 8, 128>}, {transform_indices = @transform_1, window_bounds = array<i64: 8, 128>}, {transform_indices = @transform_2, window_bounds = array<i64: 1, 8, 128>}]} {
    %c0 = arith.constant 0 : index
    %0 = memref.load %arg1[%c0] : memref<1xi32, #tpu.memory_space<smem>>
    %c8_i32 = arith.constant 8 : i32
    %1 = arith.muli %arg0, %c8_i32 : i32
    %2 = arith.subi %0, %1 : i32
    %3 = tpu.iota {dimensions = array<i32: 0>} : vector<8x128xi32>
    %cst = arith.constant 0.000000e+00 : f32
    %4 = vector.broadcast %cst : f32 to vector<8x128xf32>
    %c0_i32 = arith.constant 0 : i32
    %c8_i32_0 = arith.constant 8 : i32
    %5 = arith.muli %c0_i32, %c8_i32_0 : i32
    %6 = tpu.assume_multiple %5, 8 : i32
    %7 = arith.index_cast %6 : i32 to index
    %c0_1 = arith.constant 0 : index
    %8 = vector.load %arg2[%7, %c0_1] : memref<8x128xf32, #tpu.memory_space<vmem>>, vector<8x128xf32>
    %9 = arith.index_cast %6 : i32 to index
    %c0_2 = arith.constant 0 : index
    %10 = vector.load %arg3[%9, %c0_2] : memref<8x128xf32, #tpu.memory_space<vmem>>, vector<8x128xf32>
    %11 = arith.subf %8, %10 : vector<8x128xf32>
    %c8_i32_3 = arith.constant 8 : i32
    %12 = arith.muli %c0_i32, %c8_i32_3 : i32
    %13 = vector.broadcast %12 : i32 to vector<8x128xi32>
    %14 = arith.addi %3, %13 : vector<8x128xi32>
    %15 = vector.broadcast %2 : i32 to vector<8x128xi32>
    %16 = arith.cmpi slt, %14, %15 : vector<8x128xi32>
    %cst_4 = arith.constant 0.000000e+00 : f32
    %17 = vector.broadcast %cst_4 : f32 to vector<8x128xf32>
    %18 = arith.select %16, %11, %17 : vector<8x128xi1>, vector<8x128xf32>
    %19 = arith.mulf %18, %18 : vector<8x128xf32>
    %20 = arith.addf %4, %19 : vector<8x128xf32>
    %c1_i32 = arith.constant 1 : i32
    %21 = vector.shape_cast %20 : vector<8x128xf32> to vector<1x8x128xf32>
    %c0_5 = arith.constant 0 : index
    %c0_6 = arith.constant 0 : index
    %c0_7 = arith.constant 0 : index
    %22 = vector.load %arg4[%c0_5, %c0_6, %c0_7] : memref<1x8x128xf32, #tpu.memory_space<vmem>>, vector<1x8x128xf32>
    tpu.vector_store %arg4[%c0_5, %c0_6, %c0_7], %21 {strides = array<i32>} : memref<1x8x128xf32, #tpu.memory_space<vmem>>, vector<1x8x128xf32>,
    return
  }
  func.func @transform_0(%arg0: i32, %arg1: memref<1xi32, #tpu.memory_space<smem>>) -> (i32, i32) {
    %c0_i32 = arith.constant 0 : i32
    %c0_i32_0 = arith.constant 0 : i32
    return %arg0, %c0_i32 : i32, i32
  }
  func.func @transform_1(%arg0: i32, %arg1: memref<1xi32, #tpu.memory_space<smem>>) -> (i32, i32) {
    %c0_i32 = arith.constant 0 : i32
    %c0_i32_0 = arith.constant 0 : i32
    return %arg0, %c0_i32 : i32, i32
  }
  func.func @transform_2(%arg0: i32, %arg1: memref<1xi32, #tpu.memory_space<smem>>) -> (i32, i32, i32) {
    %c0_i32 = arith.constant 0 : i32
    %c0_i32_0 = arith.constant 0 : i32
    %c0_i32_1 = arith.constant 0 : i32
    return %arg0, %c0_i32, %c0_i32_0 : i32, i32, i32
  }
}

</mosaic_0001>

<bundles_post_ra>
// kernel: tpu_custom_call.1
= control target key start
LH: loop header
LB: loop body
LE: loop exit
PB: predicated region body
PF: predicated region fallthrough
CT: control target
= control target key end

     0   :  { %s739_s0 = inlined_call_operand.<no memory space> [shape: s32[1], index: 0, kind: input, shape index: {}]   ;;  %s740_s1 = inlined_call_operand.hbm [shape: f32[16,128], index: 1, kind: input, shape index: {}]   ;;  %s741_s2 = inlined_call_operand.hbm [shape: f32[16,128], index: 2, kind: input, shape index: {}]   ;;  %s742_s3 = inlined_call_operand.hbm [shape: f32[2,8,128], index: 3, kind: output, shape index: {}]  }
   0x1   :  { %8 = sst [smem:[#allocation3]] %s739_s0 }
   0x2   :  { %9 = vsyncpa [#allocation5], 0 }
   0x3   :  { %11 = vsyncpa [#allocation5 + $0x1], 0 }
   0x4   :  { %12 = vsyncpa [#allocation8], 0 }
   0x5   :  { %14 = vsyncpa [#allocation8 + $0x1], 0 }
   0x6   :  { %15 = vsyncpa [#allocation6], 0 }
   0x7   :  { %17 = vsyncpa [#allocation6 + $0x1], 0  ;;  %s538_s14 = smov 0   ;;  %s540_s15 = smov 0  }
   0x8   :  { %s542_s16 = smov 0   ;;  %s544_s17 = smov 0  }
   0x9 LB: > { %s559_s0 = sadd.s32 4294967295, %s510_s17   ;;  %s319_s18 = sadd.s32 4294967294, %s510_s17   ;;  %s510_s17 = sphi %s544_s17, %s761_s17   ;;  %s506_s16 = sphi %s542_s16, %s760_s16   ;;  %s502_s15 = sphi %s540_s15, %s759_s15   ;;  %s498_s14 = sphi %s538_s14, %s758_s14  }
   0xa   : > { %s563_s19 = sadd.s32 1, %s510_s17   ;;  %s30_s20 = sadd.s32 1, %s506_s16 }
   0xb   : > { %s27_s21 = ssub.s32 %s510_s17, %s563_s19  ;;  %p37_p0 = scmp.ne.s32.totalorder %s506_s16, %s502_s15 }
   0xc   : > { %p28_p1 = scmp.eq.s32.totalorder %s27_s21, 0  ;;  %p38_p2 = scmp.eq.s32.totalorder %s510_s17, 0 }
   0xd   : > { %p43_p3 = scmp.ne.s32.totalorder %s502_s15, %s498_s14  ;;  %p44_p4 = scmp.eq.s32.totalorder %s559_s0, 0 }
   0xe   : > { %s575_s22 = scalar_select %p28_p1, %s506_s16, %s30_s20  }
   0xf   : > { %p577_p5 = por %p38_p2, %p37_p0  ;;  %p581_p6 = por %p44_p4, %p43_p3 }
  0x10   : > { %p93_p7 = scmp.eq.s32.totalorder %s559_s0, 1  ;;  %p99_p8 = scmp.eq.s32.totalorder %s319_s18, 1 }
  0x11   : > { %s746_s24 = scalar_select %p581_p6, 1, 0 }
  0x12   : > { %p352_p10 = scmp.lt.s32.totalorder %s510_s17, 2  ;;  %p588_p11 = por %p93_p7, %p37_p0 }
  0x13   : > { %p592_p12 = por %p99_p8, %p43_p3  ;;  %s597_s27 = sand.u32 1, %s506_s16  }
  0x14   : > { %s747_s25 = scalar_select %p588_p11, 1, 0 }
  0x15   : > { %s748_s26 = scalar_select %p592_p12, 1, 0 }
  0x16   : > { %s323_s28 = sshll.u32 %s510_s17, 7  ;;  %s322_s29 = sshll.u32 %s597_s27, 3 }
  0x17   : > { %s606_s5 = scalar_lea.hbm %s740_s1, %s323_s28  ;;  %s123_s6 = scalar_lea.vmem [#allocation4], %s322_s29 }
  0x18   : > { %s130_s7 = sshll.u32 %s123_s6, 4  ;;  %p612_p13 = pnand %p352_p10, %p577_p5  ;;  %s616_s7 = int_to_ptr.vmem [resolvable:$true] %s130_s7 }
  0x19   : > { %s120_s9 = scalar_lea.sflag [#allocation5], %s597_s27  ;;  %s386_s10 = scalar_lea.hbm %s606_s5, 128 }
  0x1a   : > { %p387_p2 = scmp.ne.s32.totalorder %s606_s5, %s386_s10  ;;  %p388_p3 = pneg %p612_p13 }
  0x1b   : > { %s391_s13 = scalar_lea.hbm %s740_s1, 256  ;;  %p392_p5 = scmp.lt.s32.totalorder %s606_s5, %s740_s1 }
  0x1c   : > { %p389_p4 = pnand %p388_p3, %p387_p2  ;;  %p393_p8 = scmp.lt.s32.totalorder %s391_s13, %s386_s10 }
  0x1e   : > { %p390_p7 = pneg %p389_p4  ;;  %p394_p10 = por %p393_p8, %p392_p5 }
  0x20   : > { %p395_p9 = pnand %p394_p10, %p390_p7 }
  0x22   : > { %398 = shalt.err (!%p395_p9)
}
  0x23   : > { %s399_s21 = scalar_lea.vmem %s616_s7, 128  ;;  %s512_s23 = smov [#allocation4]  }
  0x24   : > { %p400_p0 = scmp.ne.s32.totalorder %s616_s7, %s399_s21  ;;  %s404_s30 = sshll.u32 %s512_s23, 4  ;;  %s405_s30 = int_to_ptr.vmem [resolvable:$false] %s404_s30 }
  0x25   : > { %s406_s4 = scalar_lea.vmem %s405_s30, 256  ;;  %p407_p1 = scmp.lt.s32.totalorder %s616_s7, %s405_s30 }
  0x26   : > { %p402_p2 = pnand %p400_p0, %p388_p3  ;;  %p408_p12 = scmp.lt.s32.totalorder %s406_s4, %s399_s21 }
  0x28   : > { %p403_p4 = pneg %p402_p2  ;;  %p409_p11 = por %p408_p12, %p407_p1 }
  0x2a   : > { %p410_p5 = pnand %p409_p11, %p403_p4 }
  0x2c   : > { %413 = shalt.err (!%p410_p5)
}
  0x2d   : > { %344 = dma.hbm_to_vmem [thread:$0]  (!%p612_p13), %s606_s5, 128, %s616_s7, %s120_s9  }
  0x2e   : > { %p750_p9 = scmp.lt.s32.totalorder %s510_s17, 3  ;;  %p751_p0 = scmp.ge.s32.totalorder %s510_s17, 1 }
  0x2f   : > { %s658_s12 = scalar_lea.hbm %s741_s2, %s323_s28  ;;  %s141_s13 = scalar_lea.vmem [#allocation7], %s322_s29 }
  0x30   : > { %p649_p7 = pnand %p751_p0, %p750_p9  ;;  %s148_s18 = sshll.u32 %s141_s13, 4  ;;  %s149_s18 = int_to_ptr.vmem [resolvable:$true] %s148_s18 }
  0x31   : > { %s138_s5 = scalar_lea.sflag [#allocation8], %s597_s27  ;;  %s414_s7 = scalar_lea.hbm %s658_s12, 128 }
  0x32   : > { %s752_s6 = scalar_select %p649_p7, 1, 0 }
  0x33   : > { %p415_p11 = scmp.ne.s32.totalorder %s658_s12, %s414_s7  ;;  %s419_s21 = scalar_lea.hbm %s741_s2, 256 }
  0x34   : > { %p420_p8 = scmp.lt.s32.totalorder %s658_s12, %s741_s2  ;;  %p421_p10 = scmp.lt.s32.totalorder %s419_s21, %s414_s7 }
  0x35   : > { %p417_p12 = pnand %p415_p11, %p388_p3 }
  0x36   : > { %p422_p2 = por %p421_p10, %p420_p8 }
  0x37   : > { %p418_p1 = pneg %p417_p12 }
  0x39   : > { %p423_p4 = pnand %p422_p2, %p418_p1 }
  0x3b   : > { %426 = shalt.err (!%p423_p4)
}
  0x3c   : > { %s427_s29 = scalar_lea.vmem %s149_s18, 128  ;;  %s513_s27 = smov [#allocation7]  }
  0x3d   : > { %p428_p5 = scmp.ne.s32.totalorder %s149_s18, %s427_s29  ;;  %s432_s30 = sshll.u32 %s513_s27, 4  ;;  %s433_s30 = int_to_ptr.vmem [resolvable:$false] %s432_s30 }
  0x3e   : > { %s434_s4 = scalar_lea.vmem %s433_s30, 256  ;;  %p435_p11 = scmp.lt.s32.totalorder %s149_s18, %s433_s30 }
  0x3f   : > { %p430_p9 = pnand %p428_p5, %p388_p3  ;;  %p436_p12 = scmp.lt.s32.totalorder %s434_s4, %s427_s29 }
  0x41   : > { %p431_p0 = pneg %p430_p9  ;;  %p437_p6 = por %p436_p12, %p435_p11 }
  0x43   : > { %p438_p7 = pnand %p437_p6, %p431_p0 }
  0x45   : > { %441 = shalt.err (!%p438_p7)
}
  0x46   : > { %347 = dma.hbm_to_vmem [thread:$0]  (!%p612_p13), %s658_s12, 128, %s149_s18, %s138_s5  }
  0x47   : > { %p753_p1 = scmp.ne.s32.totalorder %s752_s6, 0 }
  0x48   : > { %s684_s10 = sand.u32 (!%p753_p1), 1, %s502_s15   ;;  %p754_p3 = scmp.ne.s32.totalorder (!%p753_p1), %s746_s24, 0 }
  0x49   : > { %157 = sbr.rel (%p753_p1) target bundleno = 108 (0x6c), region = 28  ;;  %s327_s11 = sshll.u32 (!%p753_p1), %s684_s10, 3 }
  0x4a   : > { %s160_s13 = scalar_lea.sflag (!%p753_p1), [#allocation5], %s684_s10  ;;  %s163_s7 = scalar_lea.vmem (!%p753_p1), [#allocation4], %s327_s11 }
  0x4e   : > { %485 = dma.done.wait (%p754_p3), %s160_s13, 128  }
  0x4f   : > { %487 = vsyncadd (%p754_p3), %s160_s13, 4294967168  ;;  %s169_s8 = scalar_lea.sflag [#allocation8], %s684_s10  ;;  %s172_s12 = scalar_lea.vmem [#allocation7], %s327_s11 }
  0x50   : > { %489 = dma.done.wait (%p754_p3), %s169_s8, 128  }
  0x51   : > { %491 = vsyncadd (%p754_p3), %s169_s8, 4294967168  ;;  %s198_s6 = sld [smem:[#allocation3]]  ;;  %v201_v0 = vlaneseq  ;;  %s330_s18 = sshll.u32 %s559_s0, 3  ;;  %v203_v2 = vld [vmem:[%s163_s7] sm:$0xff]  ;;  %v204_v3 = vld [vmem:[%s172_s12] sm:$0xff] }
  0x52   : > { %s197_s9 = scalar_lea.vmem [#allocation9], %s327_s11  ;;  %v205_v4 = vsub.f32 %v203_v2, %v204_v3  ;;  %s332_s21 = sshll.u32 %s559_s0, 7 }
  0x53   : > { %v202_v1 = vshrl.u32 %v201_v0, 7  ;;  %s226_s20 = sshll.u32 %s197_s9, 4  ;;  %s224_s23 = scalar_lea.hbm %s742_s3, %s332_s21  ;;  %s699_s20 = int_to_ptr.vmem [resolvable:$true] %s226_s20 }
  0x54   : > { %s213_s29 = scalar_lea.sflag [#allocation6], %s684_s10  ;;  %s442_s27 = scalar_lea.vmem %s699_s20, 128 }
  0x55   : > { %p443_p6 = scmp.ne.s32.totalorder %s699_s20, %s442_s27  ;;  %p755_p13 = scmp.ne.s32.totalorder %s747_s25, 0 }
  0x56   : > { %s514_s0 = smov [#allocation9]  }
  0x57   : > { %s200_s5 = ssub.s32 %s198_s6, %s330_s18  ;;  %p444_p7 = pnand %p443_p6, %p755_p13 }
  0x58   : > { %v206_v5 = vstv %s200_s5  ;;  %s446_s30 = sshll.u32 %s514_s0, 4  ;;  %s447_s30 = int_to_ptr.vmem [resolvable:$false] %s446_s30 }
  0x59   : > { %vm207_vm0 = vcmp.lt.s32.totalorder %v202_v1, %v206_v5  ;;  %p445_p8 = pneg %p444_p7  ;;  %s448_s4 = scalar_lea.vmem %s447_s30, 256 }
  0x5a   : > { %v208_v6 = vsel %vm207_vm0, %v205_v4, 0.0  ;;  %p449_p10 = scmp.lt.s32.totalorder %s699_s20, %s447_s30  ;;  %p450_p2 = scmp.lt.s32.totalorder %s448_s4, %s442_s27 }
  0x5b   : > { %v209_v7 = vmul.f32 %v208_v6, %v208_v6 }
  0x5c   : > { %p451_p4 = por %p450_p2, %p449_p10 }
  0x5d   : > { %211 = vst [vmem:[%s197_s9] sm:$0xff] %v209_v7 }
  0x5e   : > { %p452_p5 = pnand %p451_p4, %p445_p8 }
  0x60   : > { %455 = shalt.err (!%p452_p5)
}
  0x61   : > { %s456_s11 = scalar_lea.hbm %s224_s23, 128  ;;  %s460_s7 = scalar_lea.hbm %s742_s3, 256 }
  0x62   : > { %p457_p9 = scmp.ne.s32.totalorder %s224_s23, %s456_s11  ;;  %p461_p12 = scmp.lt.s32.totalorder %s224_s23, %s742_s3 }
  0x63   : > { %p462_p1 = scmp.lt.s32.totalorder %s460_s7, %s456_s11 }
  0x64   : > { %p458_p0 = pnand %p457_p9, %p755_p13 }
  0x65   : > { %p463_p3 = por %p462_p1, %p461_p12 }
  0x66   : > { %p459_p11 = pneg %p458_p0 }
  0x68   : > { %p464_p6 = pnand %p463_p3, %p459_p11 }
  0x6a   : > { %467 = shalt.err (!%p464_p6)
}
  0x6b   : > { %339 = dma.vmem_to_hbm [thread:$0]  (%p755_p13), %s699_s20, 128, %s224_s23, %s213_s29  }
  0x6c PF: > { %s238_s6 = sand.u32 1, %s498_s14   ;;  %p756_p7 = scmp.ne.s32.totalorder %s748_s26, 0 }
  0x6d   : > { %p757_p8 = scmp.ge.s32.totalorder %s510_s17, 2  ;;  %s239_s18 = scalar_lea.sflag [#allocation6], %s238_s6 }
  0x6f   : > { %p349_p10 = pnand %p757_p8, %p756_p7 }
  0x71   : > { %p350_p2 = pneg %p349_p10 }
  0x73   : > { %493 = dma.done.wait (%p350_p2), %s239_s18, 128  }
  0x74   : > { %495 = vsyncadd (%p350_p2), %s239_s18, 4294967168  ;;  %p20_p4 = scmp.ge.s32.totalorder %s563_s19, 4   ;;  %s758_s14 = smov %s502_s15 }
  0x75   : > { %s759_s15 = smov %s506_s16  ;;  %s760_s16 = smov %s575_s22 }
  0x76   : > { %s761_s17 = smov %s563_s19  ;;  %22 = sbr.rel (!%p20_p4) target bundleno = 9 (0x9), region = 86 }
  0x7b   :  { %244 = vsyncpa [#allocation5], 1 }
  0x7c   :  { %246 = vsyncpa [#allocation5 + $0x1], 1 }
  0x7d   :  { %247 = vsyncpa [#allocation8], 1 }
  0x7e   :  { %249 = vsyncpa [#allocation8 + $0x1], 1 }
  0x7f   :  { %250 = vsyncpa [#allocation6], 1 }
  0x80   :  { %252 = vsyncpa [#allocation6 + $0x1], 1 }

</bundles_post_ra>
